<compile_context>
chip_gen: v7x
topology: tpu7x:2x2x1
jax: 0.10.0
libtpu: 0.0.40
codegen_flags: <defaults>
</compile_context>

<pallas_src>
import functools

import numpy as np
import jax
import jax.numpy as jnp
from jax import lax
from jax.experimental import pallas as pl
from jax.experimental.pallas import tpu as pltpu

E_LEN = 128          # model.E_LEN (synthetic, lane-aligned)
MATCH_WEIGHT = 10.0
NUM_CORE_SPLITS = 2  # v7x: 2 TensorCores; harmless extra serial axis on v5e/v6e


def _loss_match_kernel(tmap_ref, e_ref, w_ref, out_ref, acc_ref, *,
                       scale, tb, rb, total_rows):
    """Grid = (core_split, batch_tile).  Accumulates scale*|e - w| into a
    (K, E_LEN) vreg-shaped per-core accumulator; one cross-lane reduce at the
    end of each core's tile loop."""
    del tmap_ref  # consumed only by the index_maps (clamped tile indices)
    c = pl.program_id(0)              # "parallel" core-split axis
    b = pl.program_id(1)              # "arbitrary" batch-tile axis
    nb = pl.num_programs(1)

    @pl.when(b == 0)
    def _():
        acc_ref[...] = jnp.zeros_like(acc_ref)

    tile_idx = c * nb + b                       # true (unclamped) tile index
    rem = total_rows - tile_idx * tb            # valid rows in this tile (<=0 for phantom)
    n_sub = tb // rb                            # static inner trip count

    def full_body(i, carry):                    # lean path: sub / abs / accumulate
        r0 = pl.multiple_of(i * rb, rb)
        ec = e_ref[pl.ds(r0, rb)]               # (rb, K, E_LEN)
        wc = w_ref[pl.ds(r0, rb)][:, None, :]   # (rb, 1, E_LEN) -> bcast over K
        acc_ref[...] += scale * jnp.abs(ec - wc).sum(axis=0)
        return carry

    def masked_body(i, carry):                  # tail tile: mask padded rows
        r0 = pl.multiple_of(i * rb, rb)
        ec = e_ref[pl.ds(r0, rb)]
        wc = w_ref[pl.ds(r0, rb)][:, None, :]
        d = jnp.abs(ec - wc)
        row = lax.broadcasted_iota(jnp.int32, (rb, 1, 1), 0) + r0
        d = jnp.where(row < rem, d, 0.0)
        acc_ref[...] += scale * d.sum(axis=0)
        return carry

    @pl.when(rem >= tb)                         # full tile
    def _():
        lax.fori_loop(0, n_sub, full_body, 0)

    @pl.when(jnp.logical_and(rem > 0, rem < tb))   # partial tail tile
    def _():
        lax.fori_loop(0, n_sub, masked_body, 0)

    # rem <= 0: phantom tile from the core split -> contributes nothing

    @pl.when(b == nb - 1)
    def _():
        # single cross-lane/sublane reduce per core
        out_ref[...] = jnp.sum(acc_ref[...], keepdims=True).reshape(1, 1, 1)


def _pick_tiles(B, K, tile_rows=None, chunk_rows=None):
    """Return (tb, rb): batch rows per grid step / per inner fori_loop chunk.
    tb is a multiple of rb (or tb == rb == B for tiny batches)."""
    if tile_rows is not None and chunk_rows is not None:
        return tile_rows, chunk_rows
    rb = max(8, (128 // max(K, 1)) // 8 * 8)    # ~16 vregs of e per inner iteration
    if B <= rb:
        return B, B                             # tiny batch (demo): one chunk, one tile
    budget_bytes = 8 << 20                      # e block per step; x2 buffers << 32 MiB
    tb_max = max(rb, budget_bytes // (K * E_LEN * 4))
    tb = max(rb, min(B, tb_max) // rb * rb)
    return tb, rb


def loss_match(e_vectors, W, i=None, match_weight=MATCH_WEIGHT, *,
               tile_rows=None, chunk_rows=None):
    """e_vectors: (B, K, E_LEN, 1) ;  W: (E_LEN, B).  `i` unused (parity with torch)."""
    B, K, elen, one = e_vectors.shape
    assert elen == E_LEN and one == 1 and W.shape == (E_LEN, B)

    # glue: squeeze trailing dim; W transposed to a dense, lane-aligned (B, E_LEN)
    e = e_vectors[..., 0].astype(jnp.float32)       # (B, K, E_LEN)
    w = W.T.astype(jnp.float32)                     # (B, E_LEN)

    tb, rb = _pick_tiles(B, K, tile_rows, chunk_rows)
    total_tiles = pl.cdiv(B, tb)
    nc = NUM_CORE_SPLITS if total_tiles >= NUM_CORE_SPLITS else 1
    nb = pl.cdiv(total_tiles, nc)

    # Clamped tile index per (core, step); phantom tiles (odd tile counts) re-read
    # the last real tile and are fully masked in-kernel.
    tile_map = jnp.asarray(
        np.minimum(np.arange(nc * nb, dtype=np.int32), total_tiles - 1))

    scale = float(match_weight) / float(B * K * E_LEN)
    kernel = functools.partial(_loss_match_kernel, scale=scale, tb=tb, rb=rb,
                               total_rows=B)

    out = pl.pallas_call(
        kernel,
        out_shape=jax.ShapeDtypeStruct((nc, 1, 1), jnp.float32),
        grid_spec=pltpu.PrefetchScalarGridSpec(
            num_scalar_prefetch=1,
            grid=(nc, nb),
            in_specs=[
                pl.BlockSpec((tb, K, E_LEN), lambda c, b, tm: (tm[c * nb + b], 0, 0)),
                pl.BlockSpec((tb, E_LEN),    lambda c, b, tm: (tm[c * nb + b], 0)),
            ],
            out_specs=pl.BlockSpec((1, 1, 1), lambda c, b, tm: (c, 0, 0)),
            scratch_shapes=[pltpu.VMEM((K, E_LEN), jnp.float32)],
        ),
        compiler_params=pltpu.CompilerParams(
            dimension_semantics=("parallel", "arbitrary"),
            vmem_limit_bytes=32 << 20,          # v7x-safe; 8 MiB tiles x2 fit easily
        ),
    )(tile_map, e, w)
    return jnp.sum(out)   # sum the per-core partials (already scaled)


def _reference(e_vectors, W, match_weight=MATCH_WEIGHT):
    B, K, elen, _ = e_vectors.shape
    e = e_vectors[..., 0].reshape(-1, elen)                    # (B*K, E_LEN)
    w = jnp.broadcast_to(W.T[:, None, :], (B, K, elen)).reshape(-1, elen)
    return jnp.mean(jnp.abs(e - w)) * match_weight


if __name__ == "__main__":
    key = jax.random.PRNGKey(0)

    # --- demo size (matches the module's intended use) ---
    B, K = 2, 8
    k_e, k_w, k_e2, k_w2 = jax.random.split(key, 4)
    e_vectors = jax.random.normal(k_e, (B, K, E_LEN, 1), dtype=jnp.float32)
    W = jax.random.normal(k_w, (E_LEN, B), dtype=jnp.float32)
    i = 0  # unused by forward, kept for signature parity

    loss = loss_match(e_vectors, W, i)
    jax.block_until_ready(loss)
    ref = _reference(e_vectors, W)
    assert jnp.allclose(loss, ref, rtol=1e-5, atol=1e-5), (loss, ref)

    # --- small odd-size check exercising the multi-tile / core-split / masked
    #     tail-tile / phantom-tile paths (forced small tiles) ---
    B2, K2 = 37, 8
    e2 = jax.random.normal(k_e2, (B2, K2, E_LEN, 1), dtype=jnp.float32)
    W2 = jax.random.normal(k_w2, (E_LEN, B2), dtype=jnp.float32)
    loss2 = loss_match(e2, W2, i, tile_rows=16, chunk_rows=8)
    jax.block_until_ready(loss2)
    ref2 = _reference(e2, W2)
    assert jnp.allclose(loss2, ref2, rtol=1e-5, atol=1e-5), (loss2, ref2)

    print("KERNEL_OK")
</pallas_src>

<mosaic_0001>
module attributes {stable_mosaic.version = 11 : i64} {
  func.func @_loss_match_kernel(%arg0: i32, %arg1: i32, %arg2: memref<1xi32, #tpu.memory_space<smem>>, %arg3: memref<2x8x128xf32, #tpu.memory_space<vmem>>, %arg4: memref<2x128xf32, #tpu.memory_space<vmem>>, %arg5: memref<1x1x1xf32, #tpu.memory_space<vmem>>, %arg6: memref<8x128xf32, #tpu.memory_space<vmem>>) attributes {dimension_semantics = [#tpu.dimension_semantics<parallel>, #tpu.dimension_semantics<arbitrary>], iteration_bounds = array<i64: 1, 1>, scalar_prefetch = 1 : i64, scratch_operands = 1 : i64, tpu.core_type = #tpu.core_type<tc>, window_params = [{transform_indices = @transform_0, window_bounds = array<i64: 2, 8, 128>}, {transform_indices = @transform_1, window_bounds = array<i64: 2, 128>}, {transform_indices = @transform_2, window_bounds = array<i64: 1, 1, 1>}]} {
    %c0_i32 = arith.constant 0 : i32
    %0 = arith.cmpi eq, %arg1, %c0_i32 : i32
    %1 = arith.extui %0 : i1 to i32
    %c0_i32_0 = arith.constant 0 : i32
    %2 = arith.cmpi ne, %1, %c0_i32_0 : i32
    scf.if %2 {
      %cst = arith.constant 0.000000e+00 : f32
      %18 = vector.broadcast %cst : f32 to vector<8x128xf32>
      %c0 = arith.constant 0 : index
      %c0_9 = arith.constant 0 : index
      %19 = vector.load %arg6[%c0, %c0_9] : memref<8x128xf32, #tpu.memory_space<vmem>>, vector<8x128xf32>
      tpu.vector_store %arg6[%c0, %c0_9], %18 {strides = array<i32>} : memref<8x128xf32, #tpu.memory_space<vmem>>, vector<8x128xf32>,
    } else {
    }
    %c1_i32 = arith.constant 1 : i32
    %3 = arith.muli %arg0, %c1_i32 : i32
    %4 = arith.addi %3, %arg1 : i32
    %c2_i32 = arith.constant 2 : i32
    %5 = arith.muli %4, %c2_i32 : i32
    %c2_i32_1 = arith.constant 2 : i32
    %6 = arith.subi %c2_i32_1, %5 : i32
    %c2_i32_2 = arith.constant 2 : i32
    %7 = arith.cmpi sge, %6, %c2_i32_2 : i32
    %8 = arith.extui %7 : i1 to i32
    %c0_i32_3 = arith.constant 0 : i32
    %9 = arith.cmpi ne, %8, %c0_i32_3 : i32
    scf.if %9 {
      %c0_i32_9 = arith.constant 0 : i32
      %c2_i32_10 = arith.constant 2 : i32
      %18 = arith.muli %c0_i32_9, %c2_i32_10 : i32
      %19 = tpu.assume_multiple %18, 2 : i32
      %20 = arith.index_cast %19 : i32 to index
      %c0 = arith.constant 0 : index
      %c0_11 = arith.constant 0 : index
      %21 = vector.load %arg3[%20, %c0, %c0_11] : memref<2x8x128xf32, #tpu.memory_space<vmem>>, vector<2x8x128xf32>
      %22 = arith.index_cast %19 : i32 to index
      %c0_12 = arith.constant 0 : index
      %23 = vector.load %arg4[%22, %c0_12] : memref<2x128xf32, #tpu.memory_space<vmem>>, vector<2x128xf32>
      %24 = vector.shape_cast %23 : vector<2x128xf32> to vector<2x1x128xf32>
      %c0_13 = arith.constant 0 : index
      %c0_14 = arith.constant 0 : index
      %25 = vector.load %arg6[%c0_13, %c0_14] : memref<8x128xf32, #tpu.memory_space<vmem>>, vector<8x128xf32>
      %26 = vector.broadcast %24 : vector<2x1x128xf32> to vector<2x8x128xf32>
      %27 = arith.subf %21, %26 : vector<2x8x128xf32>
      %28 = math.absf %27 : vector<2x8x128xf32>
      %cst = arith.constant dense<0.000000e+00> : vector<8x128xf32>
      %29 = vector.multi_reduction <add>, %28, %cst [0] : vector<2x8x128xf32> to vector<8x128xf32>
      %cst_15 = arith.constant 0.0048828125 : f32
      %30 = vector.broadcast %cst_15 : f32 to vector<8x128xf32>
      %31 = arith.mulf %30, %29 : vector<8x128xf32>
      %32 = arith.addf %25, %31 : vector<8x128xf32>
      %c0_16 = arith.constant 0 : index
      %c0_17 = arith.constant 0 : index
      %33 = vector.load %arg6[%c0_16, %c0_17] : memref<8x128xf32, #tpu.memory_space<vmem>>, vector<8x128xf32>
      tpu.vector_store %arg6[%c0_16, %c0_17], %32 {strides = array<i32>} : memref<8x128xf32, #tpu.memory_space<vmem>>, vector<8x128xf32>,
      %c1_i32_18 = arith.constant 1 : i32
    } else {
    }
    %c0_i32_4 = arith.constant 0 : i32
    %10 = arith.cmpi sgt, %6, %c0_i32_4 : i32
    %c2_i32_5 = arith.constant 2 : i32
    %11 = arith.cmpi slt, %6, %c2_i32_5 : i32
    %12 = arith.andi %10, %11 : i1
    %13 = arith.extui %12 : i1 to i32
    %c0_i32_6 = arith.constant 0 : i32
    %14 = arith.cmpi ne, %13, %c0_i32_6 : i32
    scf.if %14 {
      %c0_i32_9 = arith.constant 0 : i32
      %c2_i32_10 = arith.constant 2 : i32
      %18 = arith.muli %c0_i32_9, %c2_i32_10 : i32
      %19 = tpu.assume_multiple %18, 2 : i32
      %20 = arith.index_cast %19 : i32 to index
      %c0 = arith.constant 0 : index
      %c0_11 = arith.constant 0 : index
      %21 = vector.load %arg3[%20, %c0, %c0_11] : memref<2x8x128xf32, #tpu.memory_space<vmem>>, vector<2x8x128xf32>
      %22 = arith.index_cast %19 : i32 to index
      %c0_12 = arith.constant 0 : index
      %23 = vector.load %arg4[%22, %c0_12] : memref<2x128xf32, #tpu.memory_space<vmem>>, vector<2x128xf32>
      %24 = vector.shape_cast %23 : vector<2x128xf32> to vector<2x1x128xf32>
      %25 = vector.broadcast %24 : vector<2x1x128xf32> to vector<2x8x128xf32>
      %26 = arith.subf %21, %25 : vector<2x8x128xf32>
      %27 = math.absf %26 : vector<2x8x128xf32>
      %28 = tpu.iota {dimensions = array<i32: 0>} : vector<2x1x1xi32>
      %29 = vector.broadcast %19 : i32 to vector<2x1x1xi32>
      %30 = arith.addi %28, %29 : vector<2x1x1xi32>
      %31 = vector.broadcast %6 : i32 to vector<2x1x1xi32>
      %32 = arith.cmpi slt, %30, %31 : vector<2x1x1xi32>
      %cst = arith.constant 0.000000e+00 : f32
      %33 = vector.shape_cast %32 : vector<2x1x1xi1> to vector<2x1x1xi1>
      %34 = vector.broadcast %33 : vector<2x1x1xi1> to vector<2x8x128xi1>
      %35 = vector.broadcast %cst : f32 to vector<2x8x128xf32>
      %36 = arith.select %34, %27, %35 : vector<2x8x128xi1>, vector<2x8x128xf32>
      %c0_13 = arith.constant 0 : index
      %c0_14 = arith.constant 0 : index
      %37 = vector.load %arg6[%c0_13, %c0_14] : memref<8x128xf32, #tpu.memory_space<vmem>>, vector<8x128xf32>
      %cst_15 = arith.constant dense<0.000000e+00> : vector<8x128xf32>
      %38 = vector.multi_reduction <add>, %36, %cst_15 [0] : vector<2x8x128xf32> to vector<8x128xf32>
      %cst_16 = arith.constant 0.0048828125 : f32
      %39 = vector.broadcast %cst_16 : f32 to vector<8x128xf32>
      %40 = arith.mulf %39, %38 : vector<8x128xf32>
      %41 = arith.addf %37, %40 : vector<8x128xf32>
      %c0_17 = arith.constant 0 : index
      %c0_18 = arith.constant 0 : index
      %42 = vector.load %arg6[%c0_17, %c0_18] : memref<8x128xf32, #tpu.memory_space<vmem>>, vector<8x128xf32>
      tpu.vector_store %arg6[%c0_17, %c0_18], %41 {strides = array<i32>} : memref<8x128xf32, #tpu.memory_space<vmem>>, vector<8x128xf32>,
      %c1_i32_19 = arith.constant 1 : i32
    } else {
    }
    %c0_i32_7 = arith.constant 0 : i32
    %15 = arith.cmpi eq, %arg1, %c0_i32_7 : i32
    %16 = arith.extui %15 : i1 to i32
    %c0_i32_8 = arith.constant 0 : i32
    %17 = arith.cmpi ne, %16, %c0_i32_8 : i32
    scf.if %17 {
      %c0 = arith.constant 0 : index
      %c0_9 = arith.constant 0 : index
      %18 = vector.load %arg6[%c0, %c0_9] : memref<8x128xf32, #tpu.memory_space<vmem>>, vector<8x128xf32>
      %19 = vector.shape_cast %18 : vector<8x128xf32> to vector<1x8x128xf32>
      %cst = arith.constant dense<0.000000e+00> : vector<1xf32>
      %20 = vector.multi_reduction <add>, %19, %cst [1, 2] : vector<1x8x128xf32> to vector<1xf32>
      %21 = vector.shape_cast %20 : vector<1xf32> to vector<1x1x1xf32>
      %22 = vector.extract %21[0, 0, 0] : f32 from vector<1x1x1xf32>
      %23 = vector.broadcast %22 : f32 to vector<1x1xf32>
      %24 = vector.shape_cast %23 : vector<1x1xf32> to vector<1x1x1xf32>
      %c0_10 = arith.constant 0 : index
      %c0_11 = arith.constant 0 : index
      %c0_12 = arith.constant 0 : index
      %25 = vector.load %arg5[%c0_10, %c0_11, %c0_12] : memref<1x1x1xf32, #tpu.memory_space<vmem>>, vector<1x1x1xf32>
      tpu.vector_store %arg5[%c0_10, %c0_11, %c0_12], %24 {strides = array<i32>} : memref<1x1x1xf32, #tpu.memory_space<vmem>>, vector<1x1x1xf32>,
    } else {
    }
    return
  }
  func.func @transform_0(%arg0: i32, %arg1: i32, %arg2: memref<1xi32, #tpu.memory_space<smem>>) -> (i32, i32, i32) {
    %c1_i32 = arith.constant 1 : i32
    %0 = arith.muli %arg0, %c1_i32 : i32
    %1 = arith.addi %0, %arg1 : i32
    %2 = arith.index_cast %1 : i32 to index
    %3 = memref.load %arg2[%2] : memref<1xi32, #tpu.memory_space<smem>>
    %c0_i32 = arith.constant 0 : i32
    %c0_i32_0 = arith.constant 0 : i32
    %c0_i32_1 = arith.constant 0 : i32
    return %3, %c0_i32, %c0_i32_0 : i32, i32, i32
  }
  func.func @transform_1(%arg0: i32, %arg1: i32, %arg2: memref<1xi32, #tpu.memory_space<smem>>) -> (i32, i32) {
    %c1_i32 = arith.constant 1 : i32
    %0 = arith.muli %arg0, %c1_i32 : i32
    %1 = arith.addi %0, %arg1 : i32
    %2 = arith.index_cast %1 : i32 to index
    %3 = memref.load %arg2[%2] : memref<1xi32, #tpu.memory_space<smem>>
    %c0_i32 = arith.constant 0 : i32
    %c0_i32_0 = arith.constant 0 : i32
    return %3, %c0_i32 : i32, i32
  }
  func.func @transform_2(%arg0: i32, %arg1: i32, %arg2: memref<1xi32, #tpu.memory_space<smem>>) -> (i32, i32, i32) {
    %c0_i32 = arith.constant 0 : i32
    %c0_i32_0 = arith.constant 0 : i32
    %c0_i32_1 = arith.constant 0 : i32
    return %arg0, %c0_i32, %c0_i32_0 : i32, i32, i32
  }
}

</mosaic_0001>

<bundles_post_ra>
// kernel: tpu_custom_call.1
= control target key start
LH: loop header
LB: loop body
LE: loop exit
PB: predicated region body
PF: predicated region fallthrough
CT: control target
= control target key end

     0   :  { %9 = vsyncpa [#allocation6], 0  ;;  %s341_s0 = inlined_call_operand.<no memory space> [shape: s32[1], index: 0, kind: input, shape index: {}]   ;;  %s342_s1 = inlined_call_operand.hbm [shape: f32[2,8,128], index: 1, kind: input, shape index: {}]   ;;  %s343_s2 = inlined_call_operand.vmem [shape: f32[2,128], index: 2, kind: input, shape index: {}]   ;;  %s344_s3 = inlined_call_operand.hbm [shape: f32[1,1,1], index: 3, kind: output, shape index: {}]  }
   0x1   :  { %10 = vsyncpa [#allocation7], 0  ;;  %s225_s14 = sshll.u32 %s341_s0, 8  ;;  %s283_s18 = smov [#allocation5]  }
   0x2   :  { %s20_s17 = scalar_lea.hbm %s342_s1, %s225_s14  ;;  %s21_s19 = sshll.u32 %s283_s18, 4  ;;  %s22_s19 = int_to_ptr.vmem [resolvable:$true] %s21_s19 }
   0x3   :  { %s233_s20 = scalar_lea.hbm %s20_s17, 256  ;;  %s235_s23 = scalar_lea.hbm %s342_s1, 256 }
   0x4   :  { %p234_p0 = scmp.ne.s32.totalorder %s20_s17, %s233_s20  ;;  %p236_p1 = scmp.lt.u32.totalorder %s20_s17, %s342_s1 }
   0x5   :  { %p237_p2 = scmp.lt.u32.totalorder %s235_s23, %s233_s20  ;;  %p239_p4 = scmp.lt.u32.totalorder %s233_s20, %s20_s17 }
   0x7   :  { %p238_p3 = por %p237_p2, %p236_p1 }
   0x9   :  { %p240_p5 = por %p239_p4, %p238_p3 }
   0xb   :  { %p241_p6 = pnand %p240_p5, %p234_p0 }
   0xd   :  { %244 = shalt.err (!%p241_p6)
}
   0xe   :  { %s245_s26 = scalar_lea.vmem %s22_s19, 256  ;;  %p250_p8 = scmp.lt.s32.totalorder %s22_s19, %s22_s19 }
   0xf   :  { %p246_p7 = scmp.ne.s32.totalorder %s22_s19, %s245_s26  ;;  %p251_p9 = scmp.lt.s32.totalorder %s245_s26, %s245_s26 }
  0x11   :  { %p252_p10 = por %p251_p9, %p250_p8 }
  0x13   :  { %p253_p11 = pnand %p252_p10, %p246_p7 }
  0x15   :  { %256 = shalt.err (!%p253_p11)
}
  0x16   :  { %s284_s27 = smov 128   ;;  %s285_s28 = smov 8  }
  0x17   :  { %27 = dma.hbm_to_vmem [thread:$0]  %s20_s17, 256, %s22_s19, [#allocation6], %s284_s27, %s284_s27, %s285_s28  }
  0x18   :  { %279 = dma.done.wait [#allocation6], 256  }
  0x19   :  { %280 = vsyncadd [#allocation6], 4294967040  ;;  %p52_p12 = scmp.lt.s32.totalorder %s341_s0, 0  ;;  %v87_v0 = vlaneseq  ;;  %v286_v1 = vmov 1966171168   ;;  %v72_v10 = vld [vmem:[#allocation5] sm:$0xff] }
  0x1a   :  { %v85_v2 = vunpack.c.l.s4 %v286_v1  ;;  %v73_v13 = vld [vmem:[#allocation5 + $0x8] sm:$0xff]  ;;  %vm195_vm0 = vcmask 0  }
  0x1b   :  { %s346_s0 = smov (!%p52_p12, %s341_s0), 0  ;;  %v88_v3 = vshrl.u32 %v87_v0, 7 }
  0x1c   :  { %v86_v4 = vunpack.c.0.s8 %v85_v2  ;;  %s222_s5 = sshll.u32 %s346_s0, 1  ;;  %s287_s0 = smov [#allocation8]  }
  0x1d   :  { %s55_s8 = scalar_lea.vmem %s343_s2, %s222_s5  ;;  %v101_v6 = vsub.s32 0, %v88_v3  ;;  %s203_s2 = sshll.u32 %s287_s0, 4  ;;  %s204_s2 = int_to_ptr.vmem [resolvable:$true] %s203_s2 }
  0x1e   :  { %v89_v5 = vsub.s32 %v86_v4, %v88_v3  ;;  %v223_v7 = vld.sshfl [vmem:[%s55_s8] sm:$0x11 pattern:$0x75316420]  ;;  %s257_s10 = scalar_lea.vmem %s204_s2, 16  ;;  %s261_s11 = scalar_lea.vmem %s204_s2, 32 }
  0x1f   :  { %v83_v8 = vcombine.high %v223_v7, %v223_v7  ;;  %p258_p13 = scmp.ne.s32.totalorder %s204_s2, %s257_s10  ;;  %p262_p0 = scmp.lt.s32.totalorder %s204_s2, %s204_s2 }
  0x20   :  { %v90_v9 = vrot.slane %v223_v7, %v89_v5  ;;  %p263_p1 = scmp.lt.s32.totalorder %s261_s11, %s257_s10 }
  0x21   :  { %v97_v11 = vrot.slane %v83_v8, %v89_v5 }
  0x22   :  { %v102_v12 = vrot.slane %v90_v9, %v101_v6  ;;  %p264_p2 = por %p263_p1, %p262_p0 }
  0x23   :  { %v106_v14 = vrot.slane %v97_v11, %v101_v6 }
  0x24   :  { %v109_v15 = vsub.f32 %v72_v10, %v102_v12  ;;  %p265_p3 = pnand %p264_p2, %p258_p13 }
  0x25   :  { %v110_v16 = vsub.f32 %v73_v13, %v106_v14 }
  0x26   :  { %v111_v17 = vand.u32 2147483647, %v109_v15 }
  0x27   :  { %v112_v18 = vand.u32 2147483647, %v110_v16 }
  0x29   :  { %v113_v19 = vadd.f32 %v112_v18, %v111_v17 }
  0x2b   :  { %v114_v20 = vmul.f32 0.0048828125, %v113_v19 }
  0x2d   :  { %185 = vadd.xlane.f32.xlu0 %v114_v20 }
  0xba   :  { %v186_v21 = vpop.xlane.xlu0 %185 }
  0xbb   :  { %v187_v22 = vrot.slane %v186_v21, 4 }
  0xbd   :  { %v188_v23 = vadd.f32 %v187_v22, %v186_v21 }
  0xbf   :  { %v189_v24 = vrot.slane %v188_v23, 2 }
  0xc1   :  { %v190_v25 = vadd.f32 %v189_v24, %v188_v23 }
  0xc3   :  { %v191_v26 = vrot.slane %v190_v25, 1 }
  0xc5   :  { %v192_v27 = vadd.f32 %v191_v26, %v190_v25 }
  0xc7   :  { %226 = vpush %v192_v27 }
  0xf8   :  { %s227_s9 = spop %226 }
  0xf9   :  { %v194_v28 = vstv %s227_s9 }
  0xfa   :  { %196 = vst.msk [vmem:[#allocation8] sm:$0x1] %vm195_vm0, %v194_v28 }
  0xfb   :  { %268 = shalt.err (!%p265_p3)
}
  0xfc   :  { %s269_s14 = scalar_lea.hbm %s344_s3, 16 }
  0xfd   :  { %p270_p4 = scmp.ne.s32.totalorder %s344_s3, %s269_s14  ;;  %p273_p5 = scmp.lt.u32.totalorder %s269_s14, %s344_s3 }
  0xff   :  { %p275_p6 = pnand %p273_p5, %p270_p4 }
 0x101   :  { %278 = shalt.err (!%p275_p6)
}
 0x102   :  { %206 = dma.vmem_to_hbm [thread:$0]  %s204_s2, 16, %s344_s3, [#allocation7]  }
 0x103   :  { %281 = dma.done.wait [#allocation7], 16  }
 0x104   :  { %282 = vsyncadd [#allocation7], 4294967280 }
 0x105   :  { %210 = vsyncpa [#allocation6], 1 }
 0x106   :  { %211 = vsyncpa [#allocation7], 1 }

</bundles_post_ra>
